<compile_context>
chip_gen: v7x
topology: tpu7x:2x2x1
jax: 0.10.0
libtpu: 0.0.40
codegen_flags: <defaults>
</compile_context>

<pallas_src>
import functools

import jax
import jax.numpy as jnp
from jax.experimental import pallas as pl
from jax.experimental.pallas import tpu as pltpu


def _round_up(x, m):
    return ((x + m - 1) // m) * m


def patch_embed_kernel(x_ref, w_ref, b_ref, o_ref):
    # x_ref: (tm, K) patch rows; w_ref: (K, E) flattened conv weight (block
    # index is grid-invariant -> stays resident in VMEM); b_ref: (1, E) f32
    # bias; o_ref: (tm, E) projected patches.  MXU matmul, f32 accumulation.
    acc = jnp.dot(x_ref[...], w_ref[...], preferred_element_type=jnp.float32)
    o_ref[...] = (acc + b_ref[...]).astype(o_ref.dtype)


def patch_embed(x, weight, bias, patch_size, *, target_tm=1024,
                compute_dtype=jnp.bfloat16, out_dtype=None):
    """x: (B, C, H, W); weight: (E, C, ph, pw); bias: (E,).

    Returns (B, Ho*Wo, E) in `out_dtype` (default: x.dtype; pass bf16 when the
    downstream consumer is bf16 to cut the dominant output-write HBM bytes).
    """
    B, C, H, W = x.shape
    E = weight.shape[0]
    ph, pw = patch_size
    assert H % ph == 0 and W % pw == 0, "image size must divide patch size"
    Ho, Wo = H // ph, W // pw
    num_patches = Ho * Wo
    out_dtype = x.dtype if out_dtype is None else out_dtype

    # --- glue: patch extraction (reshape/transpose only, no compute) ---
    # Cast to the compute dtype FIRST so the materialized (M, K) intermediate
    # and the transpose's HBM write traffic are bf16, not f32.
    # TODO(synk): this 6-D transpose is still one extra HBM pass over x;
    # folding the im2col relayout into the kernel (or accepting NHWC input
    # upstream) would remove it entirely.
    patches = x.astype(compute_dtype)
    patches = patches.reshape(B, C, Ho, ph, Wo, pw)
    patches = patches.transpose(0, 2, 4, 1, 3, 5)             # (B,Ho,Wo,C,ph,pw)
    patches = patches.reshape(B * num_patches, C * ph * pw)   # (M, K)
    M, K = patches.shape

    # Conv2d(kernel=stride=patch) == linear projection of flattened patches.
    # K order is (C, ph, pw) in both the patches and this weight reshape.
    w_flat = weight.reshape(E, K).T.astype(compute_dtype)     # (K, E)
    b_flat = bias.astype(jnp.float32).reshape(1, E)

    in_b = jnp.dtype(compute_dtype).itemsize
    out_b = jnp.dtype(out_dtype).itemsize

    # --- tile-size selection against a generation-aware VMEM budget ---
    try:
        vmem_cap = int(pltpu.get_tpu_info().vmem_capacity_bytes)
    except Exception:
        vmem_cap = 64 * 1024 * 1024            # v7x per-TC size; conservative
    budget = vmem_cap // 2                     # stay at ~50% of physical VMEM

    Kp = _round_up(K, 128)                     # lane padding of the (tm,K) tile
    Ep = _round_up(E, 128)                     # lane padding of (tm,E)/(K,E)
    # Grid-invariant weight/bias blocks are still double-buffered by Pallas.
    fixed = 2 * (_round_up(K, 16) * Ep * in_b + 8 * Ep * 4)
    per_row = 2 * (Kp * in_b + Ep * out_b)     # double-buffered x + out rows

    tm = max(8, min(target_tm, (budget - fixed) // max(1, per_row)))
    tm = (tm // 8) * 8
    tm = min(tm, _round_up(M, 8))
    # v7x has 2 TensorCores sharing the "parallel" M grid: make sure there are
    # at least 2 (roughly even) grid steps.  Harmless on single-TC v5e/v6e.
    if M > 8:
        n_steps = max(2, 2 * max(1, round(M / (2 * target_tm))))
        tm = min(tm, _round_up(pl.cdiv(M, n_steps), 8))
    tm = max(8, tm)

    grid_m = pl.cdiv(M, tm)                    # ragged last block is masked by
                                               # Pallas; no M pad / no slice.
    vmem_est = fixed + tm * per_row
    vmem_limit = int(min(int(0.6 * vmem_cap),
                         max(16 * 1024 * 1024, 2 * vmem_est)))

    cost = pl.CostEstimate(
        flops=2 * M * K * E,
        transcendentals=0,
        bytes_accessed=int(M * K * in_b + K * E * in_b + M * E * out_b + E * 4),
    )

    # Note: if an xprof trace shows exposed DMA at step boundaries on v6e, add
    # pipeline_mode=pl.Buffered(3) on the patches BlockSpec instead of growing
    # tm (512->1024-row tiles already sit at ~85-86% of HBM roofline).
    out = pl.pallas_call(
        patch_embed_kernel,
        out_shape=jax.ShapeDtypeStruct((M, E), out_dtype),
        grid_spec=pltpu.PrefetchScalarGridSpec(
            num_scalar_prefetch=0,
            grid=(grid_m,),
            in_specs=[
                pl.BlockSpec((tm, K), lambda i: (i, 0)),
                pl.BlockSpec((K, E), lambda i: (0, 0)),
                pl.BlockSpec((1, E), lambda i: (0, 0)),
            ],
            out_specs=pl.BlockSpec((tm, E), lambda i: (i, 0)),
        ),
        compiler_params=pltpu.CompilerParams(
            dimension_semantics=("parallel",),
            vmem_limit_bytes=vmem_limit,
        ),
        cost_estimate=cost,
    )(patches, w_flat, b_flat)

    return out.reshape(B, num_patches, E)


if __name__ == "__main__":
    # Small shapes consistent with the module: img_size=16, patch_size=4,
    # in_chans=4, embed_dim=32, batch=2.
    B, C, H, W = 2, 4, 16, 16
    ph = pw = 4
    E = 32

    key = jax.random.PRNGKey(0)
    kx, kw, kb = jax.random.split(key, 3)
    x = jax.random.normal(kx, (B, C, H, W), dtype=jnp.float32)
    # Synthetic Conv2d parameters (shapes from nn.Conv2d(C, E, 4, 4)).
    weight = jax.random.normal(kw, (E, C, ph, pw), dtype=jnp.float32) * 0.02
    bias = jax.random.normal(kb, (E,), dtype=jnp.float32) * 0.02

    fn = jax.jit(functools.partial(patch_embed, patch_size=(ph, pw)))
    out = jax.block_until_ready(fn(x, weight, bias))

    # Reference: plain-JAX conv-as-matmul in f32 (same semantics as
    # nn.Conv2d(kernel=stride=patch).flatten(2).transpose(1, 2)).
    # Loose tolerance because the kernel computes in bf16 with f32 accumulation.
    Ho, Wo = H // ph, W // pw
    ref_patches = x.reshape(B, C, Ho, ph, Wo, pw).transpose(0, 2, 4, 1, 3, 5)
    ref_patches = ref_patches.reshape(B, Ho * Wo, C * ph * pw)
    ref = jnp.einsum("bpk,ke->bpe", ref_patches, weight.reshape(E, -1).T) + bias
    assert out.shape == (B, Ho * Wo, E)
    assert jnp.allclose(out, ref, atol=2e-2, rtol=2e-2), \
        float(jnp.max(jnp.abs(out - ref)))

    print("KERNEL_OK")
</pallas_src>

<mosaic_0001>
module attributes {stable_mosaic.version = 11 : i64} {
  func.func @patch_embed_kernel(%arg0: i32, %arg1: memref<16x64xbf16, #tpu.memory_space<vmem>>, %arg2: memref<64x32xbf16, #tpu.memory_space<vmem>>, %arg3: memref<1x32xf32, #tpu.memory_space<vmem>>, %arg4: memref<16x32xf32, #tpu.memory_space<vmem>>) attributes {dimension_semantics = [#tpu.dimension_semantics<parallel>], iteration_bounds = array<i64: 2>, scalar_prefetch = 0 : i64, scratch_operands = 0 : i64, tpu.core_type = #tpu.core_type<tc>, window_params = [{transform_indices = @transform_0, window_bounds = array<i64: 16, 64>}, {pipeline_mode = #tpu.pipeline_mode<synchronous>, transform_indices = @transform_1, window_bounds = array<i64: 64, 32>}, {pipeline_mode = #tpu.pipeline_mode<synchronous>, transform_indices = @transform_2, window_bounds = array<i64: 1, 32>}, {transform_indices = @transform_3, window_bounds = array<i64: 16, 32>}]} {
    %c0 = arith.constant 0 : index
    %c0_0 = arith.constant 0 : index
    %0 = vector.load %arg1[%c0, %c0_0] : memref<16x64xbf16, #tpu.memory_space<vmem>>, vector<16x64xbf16>
    %c0_1 = arith.constant 0 : index
    %c0_2 = arith.constant 0 : index
    %1 = vector.load %arg2[%c0_1, %c0_2] : memref<64x32xbf16, #tpu.memory_space<vmem>>, vector<64x32xbf16>
    %cst = arith.constant dense<0.000000e+00> : vector<16x32xf32>
    %2 = tpu.matmul %0, %1, %cst {dimension_numbers = #tpu.dot_dimension_numbers<[1], [0], [0], [1], [0, 0, 1, 1], [], []>} : vector<16x64xbf16>, vector<64x32xbf16>, vector<16x32xf32> -> vector<16x32xf32>
    %c0_3 = arith.constant 0 : index
    %c0_4 = arith.constant 0 : index
    %3 = vector.load %arg3[%c0_3, %c0_4] : memref<1x32xf32, #tpu.memory_space<vmem>>, vector<1x32xf32>
    %4 = vector.broadcast %3 : vector<1x32xf32> to vector<16x32xf32>
    %5 = arith.addf %2, %4 : vector<16x32xf32>
    %c0_5 = arith.constant 0 : index
    %c0_6 = arith.constant 0 : index
    %6 = vector.load %arg4[%c0_5, %c0_6] : memref<16x32xf32, #tpu.memory_space<vmem>>, vector<16x32xf32>
    tpu.vector_store %arg4[%c0_5, %c0_6], %5 {strides = array<i32>} : memref<16x32xf32, #tpu.memory_space<vmem>>, vector<16x32xf32>,
    return
  }
  func.func @transform_0(%arg0: i32) -> (i32, i32) {
    %c0_i32 = arith.constant 0 : i32
    %c0_i32_0 = arith.constant 0 : i32
    return %arg0, %c0_i32 : i32, i32
  }
  func.func @transform_1(%arg0: i32) -> (i32, i32) {
    %c0_i32 = arith.constant 0 : i32
    %c0_i32_0 = arith.constant 0 : i32
    %c0_i32_1 = arith.constant 0 : i32
    return %c0_i32, %c0_i32_0 : i32, i32
  }
  func.func @transform_2(%arg0: i32) -> (i32, i32) {
    %c0_i32 = arith.constant 0 : i32
    %c0_i32_0 = arith.constant 0 : i32
    %c0_i32_1 = arith.constant 0 : i32
    return %c0_i32, %c0_i32_0 : i32, i32
  }
  func.func @transform_3(%arg0: i32) -> (i32, i32) {
    %c0_i32 = arith.constant 0 : i32
    %c0_i32_0 = arith.constant 0 : i32
    return %arg0, %c0_i32 : i32, i32
  }
}

</mosaic_0001>

<bundles_post_ra>
// kernel: patch_embed.1
= control target key start
LH: loop header
LB: loop body
LE: loop exit
PB: predicated region body
PF: predicated region fallthrough
CT: control target
= control target key end

     0   :  { %8 = vsyncpa [#allocation3], 0  ;;  %s634_s0 = inlined_call_operand.vmem [shape: bf16[32,64], index: 0, kind: input, shape index: {}]   ;;  %s635_s1 = inlined_call_operand.vmem [shape: bf16[64,32], index: 1, kind: input, shape index: {}]   ;;  %s636_s2 = inlined_call_operand.vmem [shape: f32[1,32], index: 2, kind: input, shape index: {}]   ;;  %s637_s3 = inlined_call_operand.hbm [shape: f32[32,32], index: 3, kind: output, shape index: {}]  }
   0x1   :  { %10 = vsyncpa [#allocation3 + $0x1], 0  ;;  %s517_s12 = smov 0   ;;  %s519_s13 = smov 0  }
   0x2   :  { %s521_s14 = smov 0   ;;  %s523_s15 = smov 0  }
   0x3 LB: > { %s538_s16 = sadd.s32 4294967295, %s490_s15   ;;  %s343_s17 = sadd.s32 4294967294, %s490_s15   ;;  %s490_s15 = sphi %s523_s15, %s643_s15   ;;  %s486_s14 = sphi %s521_s14, %s642_s14   ;;  %s482_s13 = sphi %s519_s13, %s641_s13   ;;  %s478_s12 = sphi %s517_s12, %s640_s12  }
   0x4   : > { %s542_s18 = sadd.s32 1, %s490_s15   ;;  %s91_s19 = sadd.s32 1, %s486_s14 }
   0x5   : > { %s88_s20 = ssub.s32 %s490_s15, %s542_s18  ;;  %p101_p0 = scmp.ne.s32.totalorder %s486_s14, %s482_s13 }
   0x6   : > { %p89_p1 = scmp.eq.s32.totalorder %s88_s20, 0  ;;  %p102_p2 = scmp.eq.s32.totalorder %s538_s16, 1 }
   0x7   : > { %p107_p3 = scmp.ne.s32.totalorder %s482_s13, %s478_s12  ;;  %p108_p4 = scmp.eq.s32.totalorder %s343_s17, 1 }
   0x8   : > { %s553_s21 = scalar_select %p89_p1, %s486_s14, %s91_s19  }
   0x9   : > { %p555_p5 = por %p102_p2, %p101_p0  ;;  %p559_p6 = por %p108_p4, %p107_p3 }
   0xa   : > { %p346_p7 = scmp.ge.s32.totalorder %s490_s15, 1  ;;  %p141_p8 = scmp.lt.s32.totalorder %s490_s15, 3 }
   0xc   : > { %p142_p9 = pnand %p346_p7, %p141_p8 }
   0xd   : > { %v423_v0 = vld [vmem:[%s635_s1] sm:$0xff] (!%p142_p9)   ;;  %v492_v1 = vmov (!%p142_p9), 0.0   ;;  %v424_v2 = vld [vmem:[%s635_s1 + $0x8] sm:$0xff] (!%p142_p9)   ;;  %vm493_vm0 = vmmov (!%p142_p9), 0   ;;  %s348_s28 = sshll.u32 (!%p142_p9), %s538_s16, 1  ;;  %v425_v3 = vld [vmem:[%s635_s1 + $0x10] sm:$0xff] (!%p142_p9)  }
   0xe   : > { %145 = sbr.rel (%p142_p9) target bundleno = 261 (0x105), region = 32  ;;  %368 = vmatprep.subr.bf16.mxu0 (!%p142_p9), %v492_v1  ;;  %376 = vmatprep.mubr.msk.bf16.mxu0 (!%p142_p9), %vm493_vm0, %v492_v1  ;;  %p166_p10 = scmp.lt.s32.totalorder (!%p142_p9), %s348_s28, 3  ;;  %v426_v4 = vld [vmem:[%s635_s1 + $0x18] sm:$0xff] (!%p142_p9)   ;;  %vm219_vm1 = vcmask (!%p142_p9), 523264   ;;  %v350_v6 = vld [vmem:[%s636_s2] ss:$0 sm:$0xff] (!%p142_p9) }
   0xf   : > { %369 = vmatpush3.bf16.msra.mxu0 (!%p142_p9), %v423_v0  ;;  %s162_s10 = sand.u32 (!%p142_p9), 1, %s482_s13   ;;  %s362_s25 = sshll.u32 (!%p142_p9), %s538_s16, 8  ;;  %vm264_vm2 = vcmask (!%p142_p9), 261120  }
  0x10   : > { %370 = vmatprep.subr.bf16.mxu0 (!%p142_p9), %v492_v1  ;;  %s347_s11 = sshll.u32 (!%p142_p9), %s162_s10, 4  ;;  %s593_s16 = scalar_lea.sflag (!%p142_p9), [#allocation3], %s162_s10 }
  0x11   : > { %s164_s20 = scalar_lea.vmem (!%p142_p9), [#allocation2], %s347_s11  ;;  %s494_s30 = smov (!%p142_p9), [#allocation2]  }
  0x12   : > { %s281_s24 = sshll.u32 (!%p142_p9), %s164_s20, 4  ;;  %s586_s24 = int_to_ptr.vmem [resolvable:$true] %s281_s24 }
  0x13   : > { %371 = vmatpush3.bf16.msra.mxu0 (!%p142_p9), %v424_v2  ;;  %s428_s29 = scalar_lea.vmem (!%p142_p9), %s586_s24, 256 }
  0x14   : > { %372 = vmatprep.subr.bf16.mxu0 (!%p142_p9), %v492_v1  ;;  %p429_p11 = scmp.ne.s32.totalorder (!%p142_p9), %s586_s24, %s428_s29 }
  0x15   : > { %s645_s28 = smov (!%p166_p10, %s348_s28), 3 }
  0x16   : > { %s349_s4 = sshll.u32 %s645_s28, 2  ;;  %s591_s28 = scalar_lea.hbm %s637_s3, %s362_s25 }
  0x17   : > { %s169_s7 = scalar_lea.vmem %s634_s0, %s349_s4  ;;  %373 = vmatpush3.bf16.msra.mxu0 %v425_v3  ;;  %p430_p12 = pnand %p429_p11, %p555_p5 }
  0x18   : > { %374 = vmatprep.subr.bf16.mxu0 %v492_v1  ;;  %v427_v5 = vld [vmem:[%s169_s7] sm:$0xff]   ;;  %s432_s4 = sshll.u32 %s494_s30, 4  ;;  %s433_s4 = int_to_ptr.vmem [resolvable:$false] %s432_s4 }
  0x19   : > { %p431_p13 = pneg %p430_p12  ;;  %s434_s5 = scalar_lea.vmem %s433_s4, 512 }
  0x1a   : > { %p435_p0 = scmp.lt.s32.totalorder %s586_s24, %s433_s4  ;;  %p436_p1 = scmp.lt.s32.totalorder %s434_s5, %s428_s29 }
  0x1b   : > { %375 = vmatpush3.bf16.msra.mxu0 %v426_v4 }
  0x1c   : > { %p437_p2 = por %p436_p1, %p435_p0 }
  0x1e   : > { %377 = vmatmul.mubr.msk.bf16.vlgmr.msra.gmra.mrb[0].mxu0 %vm219_vm1, %v427_v5  ;;  %p438_p3 = pnand %p437_p2, %p431_p13 }
  0xf1   : > { %v257_v7 = vpop.f32.mrb[0].mxu0 }
  0xf2   : > { %v258_v8 = vadd.f32 %v350_v6, %v257_v7  ;;  %v378_v9 = vpop.f32.mrb[1].mxu0 }
  0xf3   : > { %v260_v10 = vpop.f32.mrb[2].mxu0 }
  0xf4   : > { %265 = vst.msk [vmem:[%s164_s20] sm:$0xff] %vm264_vm2, %v258_v8  ;;  %v261_v11 = vadd.f32 %v350_v6, %v260_v10  ;;  %v379_v12 = vpop.f32.mrb[3].mxu0 }
  0xf6   : > { %266 = vst.msk [vmem:[%s164_s20 + $0x8] sm:$0xff] %vm264_vm2, %v261_v11 }
  0xf7   : > { %441 = shalt.err (!%p438_p3)
}
  0xf8   : > { %s442_s6 = scalar_lea.hbm %s591_s28, 256  ;;  %s446_s9 = scalar_lea.hbm %s637_s3, 512 }
  0xf9   : > { %p443_p4 = scmp.ne.s32.totalorder %s591_s28, %s442_s6  ;;  %p447_p9 = scmp.lt.u32.totalorder %s591_s28, %s637_s3 }
  0xfa   : > { %p448_p10 = scmp.lt.u32.totalorder %s446_s9, %s442_s6  ;;  %p450_p12 = scmp.lt.u32.totalorder %s442_s6, %s591_s28 }
  0xfb   : > { %p444_p7 = pnand %p443_p4, %p555_p5 }
  0xfc   : > { %p449_p11 = por %p448_p10, %p447_p9 }
  0xfd   : > { %p445_p8 = pneg %p444_p7 }
  0xfe   : > { %p451_p13 = por %p450_p12, %p449_p11 }
 0x100   : > { %p452_p0 = pnand %p451_p13, %p445_p8 }
 0x102   : > { %455 = shalt.err (!%p452_p0)
}
 0x103   : > { %s495_s17 = smov 128   ;;  %s496_s19 = smov 8  }
 0x104   : > { %380 = dma.vmem_to_hbm [thread:$0]  (%p555_p5), %s586_s24, 256, %s591_s28, %s593_s16, %s495_s17, %s495_s17, %s496_s19  }
 0x105 PF: > { %p386_p1 = scmp.ge.s32.totalorder %s490_s15, 2  ;;  %s296_s20 = sand.u32 1, %s478_s12  }
 0x106   : > { %s297_s25 = scalar_lea.sflag [#allocation3], %s296_s20 }
 0x107   : > { %p383_p2 = pnand %p386_p1, %p559_p6 }
 0x109   : > { %473 = dma.done.wait (!%p383_p2), %s297_s25, 256  }
 0x10a   : > { %475 = vsyncadd (!%p383_p2), %s297_s25, 4294967040  ;;  %p13_p3 = scmp.ge.s32.totalorder %s542_s18, 4   ;;  %s640_s12 = smov %s482_s13 }
 0x10b   : > { %s641_s13 = smov %s486_s14  ;;  %s642_s14 = smov %s553_s21 }
 0x10c   : > { %s643_s15 = smov %s542_s18  ;;  %15 = sbr.rel (!%p13_p3) target bundleno = 3 (0x3), region = 67 }
 0x113   :  { %302 = vsyncpa [#allocation3], 1 }
 0x114   :  { %304 = vsyncpa [#allocation3 + $0x1], 1 }

</bundles_post_ra>
